<compile_context>
chip_gen: v7x
topology: tpu7x:2x2x1
jax: 0.10.0
libtpu: 0.0.40
codegen_flags: <defaults>
</compile_context>

<pallas_src>
import jax
import jax.numpy as jnp
from jax.experimental import pallas as pl
from jax.experimental.pallas import tpu as pltpu


def _rope_kernel_f32(q_ref, k_ref, cos_ref, psin_ref, qo_ref, ko_ref):
    # f32 path: sin folded into the permutation matrix (exact: one +-sin per column).
    cos = cos_ref[...]                        # (1, W) f32
    psin = psin_ref[...]                      # (W, W) f32, entries in {-sin, 0, +sin}
    q = q_ref[...]                            # (block_rows, W) f32
    k = k_ref[...]
    qo_ref[...] = q * cos + jnp.dot(q, psin, preferred_element_type=jnp.float32)
    ko_ref[...] = k * cos + jnp.dot(k, psin, preferred_element_type=jnp.float32)


def _rope_kernel_lowp(q_ref, k_ref, cos_ref, sin_ref, perm_ref, qo_ref, ko_ref):
    # Sub-32-bit path: feed the MXU the raw input dtype (+-1 perm is exact in bf16),
    # accumulate in f32, do the cos/sin combine in f32 on the VPU, cast back.
    cos = cos_ref[...]                        # (1, W) f32
    sin = sin_ref[...]                        # (1, W) f32
    perm = perm_ref[...]                      # (W, W) input dtype, entries in {-1,0,+1}
    q = q_ref[...]
    k = k_ref[...]
    q_rot = jnp.dot(q, perm, preferred_element_type=jnp.float32)
    k_rot = jnp.dot(k, perm, preferred_element_type=jnp.float32)
    qo_ref[...] = (q.astype(jnp.float32) * cos + q_rot * sin).astype(qo_ref.dtype)
    ko_ref[...] = (k.astype(jnp.float32) * cos + k_rot * sin).astype(ko_ref.dtype)


def _make_tables(dim, seq, base, repeats):
    """f32 cos/sin row-vectors (tiled `repeats` times) and block-diagonal +-1 perm."""
    half = dim // 2
    inv_freq = base ** (-(jnp.arange(0, dim, 2, dtype=jnp.float32) / dim))
    emb = jnp.repeat(inv_freq, 2)                          # [f0,f0,f1,f1,...]  (dim,)
    ang = jnp.float32(seq) * emb
    cos = jnp.cos(ang)
    sin = jnp.sin(ang)
    j = jnp.arange(half)
    perm = jnp.zeros((dim, dim), jnp.float32)
    perm = perm.at[2 * j + 1, j].set(-1.0)                 # -x_odd  -> first half
    perm = perm.at[2 * j, half + j].set(1.0)               #  x_even -> second half
    if repeats > 1:
        cos = jnp.tile(cos, repeats)
        sin = jnp.tile(sin, repeats)
        perm = jnp.kron(jnp.eye(repeats, dtype=jnp.float32), perm)
    return cos[None, :], sin[None, :], perm


def _choose_fold(n, dim):
    """Fold r rows into the lane axis, targeting W = 256 lanes (full 256-wide MXU,
    wide unmasked stores).  Require n % r == 0 so packing is a pure reshape (no pad)."""
    if dim >= 256 or 256 % dim != 0:
        return 1
    r = 256 // dim
    while r > 1 and n % r != 0:
        r //= 2
    return r


def rotary_embedding(q, k, base=10000.0, block_bytes=2 << 20):
    assert q.shape == k.shape and q.dtype == k.dtype
    batch, seq, dim = q.shape
    assert dim % 2 == 0
    dtype = q.dtype
    itemsize = jnp.dtype(dtype).itemsize

    n = batch * seq
    r = _choose_fold(n, dim)
    W = r * dim
    m_rows = n // r

    cos, sin, perm = _make_tables(dim, seq, base, r)

    # ~2 MiB pipelined row blocks: keeps the kernel HBM-bandwidth bound with <10%
    # per-step overhead even on v7x, while 8 double-buffered row buffers plus the
    # in-kernel f32 temporaries stay well under the raised 48 MiB scoped-VMEM limit
    # (and under v7x's 64 MiB physical VMEM).
    block_rows = max(32, (block_bytes // (W * itemsize)) // 32 * 32)
    block_rows = min(block_rows, m_rows)        # full-extent block for small inputs
    grid = (pl.cdiv(m_rows, block_rows),)       # partial edge block is masked by Pallas;
                                                # rows are independent -> no padding.

    row_spec = pl.BlockSpec((block_rows, W), lambda i: (i, 0))
    vec_spec = pl.BlockSpec((1, W), lambda i: (0, 0))
    mat_spec = pl.BlockSpec((W, W), lambda i: (0, 0))

    if dtype == jnp.float32:
        kernel = _rope_kernel_f32
        psin = perm * sin                       # fold sin into perm (exact for f32)
        tables = (cos, psin)
        table_specs = [vec_spec, mat_spec]
    else:
        kernel = _rope_kernel_lowp
        tables = (cos, sin, perm.astype(dtype))  # +-1 is exact in bf16
        table_specs = [vec_spec, vec_spec, mat_spec]

    # Pure, copy-free reshapes (contiguous): no extra HBM traffic.
    q2d = q.reshape(m_rows, W)
    k2d = k.reshape(m_rows, W)

    q_out, k_out = pl.pallas_call(
        kernel,
        out_shape=(jax.ShapeDtypeStruct((m_rows, W), dtype),
                   jax.ShapeDtypeStruct((m_rows, W), dtype)),
        grid=grid,
        in_specs=[row_spec, row_spec] + table_specs,
        out_specs=(row_spec, row_spec),
        compiler_params=pltpu.CompilerParams(
            dimension_semantics=("parallel",),
            vmem_limit_bytes=48 * 1024 * 1024),
    )(q2d, k2d, *tables)

    return q_out.reshape(batch, seq, dim), k_out.reshape(batch, seq, dim)


def _reference(q, k, base=10000.0):
    dim = q.shape[-1]
    seq = q.shape[1]
    inv_freq = base ** (-(jnp.arange(0, dim, 2, dtype=jnp.float32) / dim))
    emb = jnp.repeat(inv_freq, 2)
    sin, cos = jnp.sin(seq * emb), jnp.cos(seq * emb)

    def rotate(x):
        x1, x2 = x[..., :-1:2], x[..., 1::2]
        x_rot = jnp.concatenate((-x2, x1), axis=-1)
        return x * cos + x_rot * sin

    return rotate(q), rotate(k)


if __name__ == "__main__":
    key = jax.random.PRNGKey(0)
    kq, kk = jax.random.split(key)
    batch, seq, dim = 2, 8, 32
    q = jax.random.normal(kq, (batch, seq, dim), dtype=jnp.float32)
    k = jax.random.normal(kk, (batch, seq, dim), dtype=jnp.float32)

    q_out, k_out = rotary_embedding(q, k)
    jax.block_until_ready((q_out, k_out))

    q_ref, k_ref = _reference(q, k)
    assert q_out.shape == q.shape and k_out.shape == k.shape
    assert jnp.allclose(q_out, q_ref, atol=1e-5, rtol=1e-5)
    assert jnp.allclose(k_out, k_ref, atol=1e-5, rtol=1e-5)

    print("KERNEL_OK")
</pallas_src>

<mosaic_0001>
module attributes {stable_mosaic.version = 11 : i64} {
  func.func @_rope_kernel_f32(%arg0: i32, %arg1: memref<2x256xf32, #tpu.memory_space<vmem>>, %arg2: memref<2x256xf32, #tpu.memory_space<vmem>>, %arg3: memref<1x256xf32, #tpu.memory_space<vmem>>, %arg4: memref<256x256xf32, #tpu.memory_space<vmem>>, %arg5: memref<2x256xf32, #tpu.memory_space<vmem>>, %arg6: memref<2x256xf32, #tpu.memory_space<vmem>>) attributes {dimension_semantics = [#tpu.dimension_semantics<parallel>], iteration_bounds = array<i64: 1>, scalar_prefetch = 0 : i64, scratch_operands = 0 : i64, tpu.core_type = #tpu.core_type<tc>, window_params = [{transform_indices = @transform_0, window_bounds = array<i64: 2, 256>}, {transform_indices = @transform_1, window_bounds = array<i64: 2, 256>}, {pipeline_mode = #tpu.pipeline_mode<synchronous>, transform_indices = @transform_2, window_bounds = array<i64: 1, 256>}, {pipeline_mode = #tpu.pipeline_mode<synchronous>, transform_indices = @transform_3, window_bounds = array<i64: 256, 256>}, {transform_indices = @transform_4, window_bounds = array<i64: 2, 256>}, {transform_indices = @transform_5, window_bounds = array<i64: 2, 256>}]} {
    %c0 = arith.constant 0 : index
    %c0_0 = arith.constant 0 : index
    %0 = vector.load %arg3[%c0, %c0_0] : memref<1x256xf32, #tpu.memory_space<vmem>>, vector<1x256xf32>
    %c0_1 = arith.constant 0 : index
    %c0_2 = arith.constant 0 : index
    %1 = vector.load %arg4[%c0_1, %c0_2] : memref<256x256xf32, #tpu.memory_space<vmem>>, vector<256x256xf32>
    %c0_3 = arith.constant 0 : index
    %c0_4 = arith.constant 0 : index
    %2 = vector.load %arg1[%c0_3, %c0_4] : memref<2x256xf32, #tpu.memory_space<vmem>>, vector<2x256xf32>
    %c0_5 = arith.constant 0 : index
    %c0_6 = arith.constant 0 : index
    %3 = vector.load %arg2[%c0_5, %c0_6] : memref<2x256xf32, #tpu.memory_space<vmem>>, vector<2x256xf32>
    %4 = vector.broadcast %0 : vector<1x256xf32> to vector<2x256xf32>
    %5 = arith.mulf %2, %4 : vector<2x256xf32>
    %cst = arith.constant dense<0.000000e+00> : vector<2x256xf32>
    %6 = tpu.matmul %2, %1, %cst {dimension_numbers = #tpu.dot_dimension_numbers<[1], [0], [0], [1], [0, 0, 1, 1], [], []>} : vector<2x256xf32>, vector<256x256xf32>, vector<2x256xf32> -> vector<2x256xf32>
    %7 = arith.addf %5, %6 : vector<2x256xf32>
    %c0_7 = arith.constant 0 : index
    %c0_8 = arith.constant 0 : index
    %8 = vector.load %arg5[%c0_7, %c0_8] : memref<2x256xf32, #tpu.memory_space<vmem>>, vector<2x256xf32>
    tpu.vector_store %arg5[%c0_7, %c0_8], %7 {strides = array<i32>} : memref<2x256xf32, #tpu.memory_space<vmem>>, vector<2x256xf32>,
    %9 = vector.broadcast %0 : vector<1x256xf32> to vector<2x256xf32>
    %10 = arith.mulf %3, %9 : vector<2x256xf32>
    %cst_9 = arith.constant dense<0.000000e+00> : vector<2x256xf32>
    %11 = tpu.matmul %3, %1, %cst_9 {dimension_numbers = #tpu.dot_dimension_numbers<[1], [0], [0], [1], [0, 0, 1, 1], [], []>} : vector<2x256xf32>, vector<256x256xf32>, vector<2x256xf32> -> vector<2x256xf32>
    %12 = arith.addf %10, %11 : vector<2x256xf32>
    %c0_10 = arith.constant 0 : index
    %c0_11 = arith.constant 0 : index
    %13 = vector.load %arg6[%c0_10, %c0_11] : memref<2x256xf32, #tpu.memory_space<vmem>>, vector<2x256xf32>
    tpu.vector_store %arg6[%c0_10, %c0_11], %12 {strides = array<i32>} : memref<2x256xf32, #tpu.memory_space<vmem>>, vector<2x256xf32>,
    return
  }
  func.func @transform_0(%arg0: i32) -> (i32, i32) {
    %c0_i32 = arith.constant 0 : i32
    %c0_i32_0 = arith.constant 0 : i32
    return %arg0, %c0_i32 : i32, i32
  }
  func.func @transform_1(%arg0: i32) -> (i32, i32) {
    %c0_i32 = arith.constant 0 : i32
    %c0_i32_0 = arith.constant 0 : i32
    return %arg0, %c0_i32 : i32, i32
  }
  func.func @transform_2(%arg0: i32) -> (i32, i32) {
    %c0_i32 = arith.constant 0 : i32
    %c0_i32_0 = arith.constant 0 : i32
    %c0_i32_1 = arith.constant 0 : i32
    return %c0_i32, %c0_i32_0 : i32, i32
  }
  func.func @transform_3(%arg0: i32) -> (i32, i32) {
    %c0_i32 = arith.constant 0 : i32
    %c0_i32_0 = arith.constant 0 : i32
    %c0_i32_1 = arith.constant 0 : i32
    return %c0_i32, %c0_i32_0 : i32, i32
  }
  func.func @transform_4(%arg0: i32) -> (i32, i32) {
    %c0_i32 = arith.constant 0 : i32
    %c0_i32_0 = arith.constant 0 : i32
    return %arg0, %c0_i32 : i32, i32
  }
  func.func @transform_5(%arg0: i32) -> (i32, i32) {
    %c0_i32 = arith.constant 0 : i32
    %c0_i32_0 = arith.constant 0 : i32
    return %arg0, %c0_i32 : i32, i32
  }
}

</mosaic_0001>

<bundles_post_ra>
// kernel: tpu_custom_call.1
= control target key start
LH: loop header
LB: loop body
LE: loop exit
PB: predicated region body
PF: predicated region fallthrough
CT: control target
= control target key end

     0   :  { %11 = vsyncpa [#allocation3], 0  ;;  %s743_s0 = inlined_call_operand.hbm [shape: f32[2,256], index: 0, kind: input, shape index: {}]   ;;  %s744_s1 = inlined_call_operand.hbm [shape: f32[2,256], index: 1, kind: input, shape index: {}]   ;;  %s745_s2 = inlined_call_operand.vmem [shape: f32[1,256], index: 2, kind: input, shape index: {}]   ;;  %s746_s3 = inlined_call_operand.hbm [shape: f32[256,256], index: 3, kind: input, shape index: {}]   ;;  %s747_s4 = inlined_call_operand.hbm [shape: f32[2,256], index: 4, kind: output, shape index: {0}]   ;;  %s748_s5 = inlined_call_operand.hbm [shape: f32[2,256], index: 5, kind: output, shape index: {1}]  }
   0x1   :  { %12 = vsyncpa [#allocation6], 0 }
   0x2   :  { %13 = vsyncpa [#allocation4], 0 }
   0x3   :  { %14 = vsyncpa [#allocation10], 0  ;;  %s619_s18 = smov [#allocation5]   ;;  %s620_s20 = smov [#allocation2]  }
   0x4   :  { %s31_s19 = sshll.u32 %s619_s18, 4  ;;  %s21_s21 = sshll.u32 %s620_s20, 4  ;;  %s32_s19 = int_to_ptr.vmem [resolvable:$true] %s31_s19  ;;  %s22_s21 = int_to_ptr.vmem [resolvable:$true] %s21_s21 }
   0x5   :  { %s501_s24 = scalar_lea.hbm %s744_s1, 64 }
   0x6   :  { %p502_p0 = scmp.ne.s32.totalorder %s744_s1, %s501_s24  ;;  %p505_p1 = scmp.lt.u32.totalorder %s501_s24, %s744_s1 }
   0x8   :  { %p507_p2 = pnand %p505_p1, %p502_p0 }
   0xa   :  { %510 = shalt.err (!%p507_p2)
}
   0xb   :  { %s511_s29 = scalar_lea.vmem %s32_s19, 64  ;;  %p516_p4 = scmp.lt.s32.totalorder %s32_s19, %s32_s19 }
   0xc   :  { %p512_p3 = scmp.ne.s32.totalorder %s32_s19, %s511_s29  ;;  %p517_p5 = scmp.lt.s32.totalorder %s511_s29, %s511_s29 }
   0xe   :  { %p518_p6 = por %p517_p5, %p516_p4 }
  0x10   :  { %p519_p7 = pnand %p518_p6, %p512_p3 }
  0x12   :  { %522 = shalt.err (!%p519_p7)
}
  0x13   :  { %34 = dma.hbm_to_vmem [thread:$0]  %s744_s1, 64, %s32_s19, [#allocation6]  }
  0x14   :  { %s523_s9 = scalar_lea.hbm %s743_s0, 64 }
  0x15   :  { %p524_p8 = scmp.ne.s32.totalorder %s743_s0, %s523_s9  ;;  %p527_p9 = scmp.lt.u32.totalorder %s523_s9, %s743_s0 }
  0x17   :  { %p529_p10 = pnand %p527_p9, %p524_p8 }
  0x19   :  { %532 = shalt.err (!%p529_p10)
}
  0x1a   :  { %s533_s14 = scalar_lea.vmem %s22_s21, 64  ;;  %p538_p12 = scmp.lt.s32.totalorder %s22_s21, %s22_s21 }
  0x1b   :  { %p534_p11 = scmp.ne.s32.totalorder %s22_s21, %s533_s14  ;;  %p539_p13 = scmp.lt.s32.totalorder %s533_s14, %s533_s14 }
  0x1d   :  { %p540_p0 = por %p539_p13, %p538_p12 }
  0x1f   :  { %p541_p1 = pnand %p540_p0, %p534_p11 }
  0x21   :  { %544 = shalt.err (!%p541_p1)
}
  0x22   :  { %24 = dma.hbm_to_vmem [thread:$0]  %s743_s0, 64, %s22_s21, [#allocation3]  }
  0x23   :  { %s621_s16 = smov [#allocation7]   ;;  %s545_s20 = scalar_lea.hbm %s746_s3, 8192 }
  0x24   :  { %s42_s17 = sshll.u32 %s621_s16, 4  ;;  %p546_p2 = scmp.ne.s32.totalorder %s746_s3, %s545_s20  ;;  %s43_s17 = int_to_ptr.vmem [resolvable:$true] %s42_s17 }
  0x25   :  { %p549_p3 = scmp.lt.u32.totalorder %s545_s20, %s746_s3 }
  0x27   :  { %p551_p4 = pnand %p549_p3, %p546_p2 }
  0x29   :  { %554 = shalt.err (!%p551_p4)
}
  0x2a   :  { %s555_s26 = scalar_lea.vmem %s43_s17, 8192  ;;  %p560_p6 = scmp.lt.s32.totalorder %s43_s17, %s43_s17 }
  0x2b   :  { %p556_p5 = scmp.ne.s32.totalorder %s43_s17, %s555_s26  ;;  %p561_p7 = scmp.lt.s32.totalorder %s555_s26, %s555_s26 }
  0x2d   :  { %p562_p8 = por %p561_p7, %p560_p6 }
  0x2f   :  { %p563_p9 = pnand %p562_p8, %p556_p5 }
  0x31   :  { %566 = shalt.err (!%p563_p9)
}
  0x32   :  { %s622_s0 = smov 256   ;;  %s623_s21 = smov 16  }
  0x33   :  { %48 = dma.hbm_to_vmem [thread:$0]  %s746_s3, 8192, %s43_s17, [#allocation6], %s622_s0, %s622_s0, %s623_s21  }
  0x34   :  { %611 = dma.done.wait [#allocation3], 64  }
  0x35   :  { %612 = vsyncadd [#allocation3], 4294967232 }
  0x36   :  { %613 = dma.done.wait [#allocation6], 8256  }
  0x37   :  { %614 = vsyncadd [#allocation6], 4294959040  ;;  %v60_v0 = vld [vmem:[#allocation7 + $0x8] sm:$0xff]  ;;  %v62_v1 = vld [vmem:[#allocation7 + $0x18] sm:$0xff]  ;;  %v126_v25 = vlaneseq  ;;  %v624_v26 = vmov 1983009808  }
  0x38   :  { %v59_v2 = vld [vmem:[#allocation7] sm:$0xff]  ;;  %v365_v3 = vpack.c.bf16 %v62_v1, %v60_v0  ;;  %v61_v4 = vld [vmem:[#allocation7 + $0x10] sm:$0xff]  ;;  %v64_v5 = vld [vmem:[#allocation7 + $0x28] sm:$0xff]  ;;  %v136_v27 = vunpack.c.l.s4 %v624_v26  ;;  %s626_s6 = smov [#allocation9]  }
  0x39   :  { %v66_v6 = vld [vmem:[#allocation7 + $0x38] sm:$0xff]  ;;  %v367_v7 = vpack.c.bf16 %v61_v4, %v59_v2  ;;  %v63_v9 = vld [vmem:[#allocation7 + $0x20] sm:$0xff]  ;;  %v65_v10 = vld [vmem:[#allocation7 + $0x30] sm:$0xff]  ;;  %v127_v34 = vshrl.u32 %v126_v25, 7  ;;  %s351_s7 = sshll.u32 %s626_s6, 4  ;;  %s352_s7 = int_to_ptr.vmem [resolvable:$true] %s351_s7 }
  0x3a   :  { %v369_v8 = vpack.c.bf16 %v66_v6, %v64_v5  ;;  %v68_v11 = vld [vmem:[#allocation7 + $0x48] sm:$0xff]  ;;  %366 = vmatprep.subr.bf16.mxu0 %v365_v3  ;;  %430 = vmatprep.subr.bf16.mxu1 %v365_v3  ;;  %v70_v12 = vld [vmem:[#allocation7 + $0x58] sm:$0xff]  ;;  %v371_v13 = vpack.c.bf16 %v65_v10, %v63_v9  ;;  %v67_v15 = vld [vmem:[#allocation7 + $0x40] sm:$0xff]  ;;  %v137_v35 = vunpack.c.0.s8 %v136_v27 }
  0x3b   :  { %368 = vmatpush1.bf16.msra.mxu0 %v367_v7  ;;  %432 = vmatpush1.bf16.msra.mxu1 %v367_v7  ;;  %v373_v14 = vpack.c.bf16 %v70_v12, %v68_v11  ;;  %v69_v16 = vld [vmem:[#allocation7 + $0x50] sm:$0xff]  ;;  %v72_v17 = vld [vmem:[#allocation7 + $0x68] sm:$0xff]  ;;  %v74_v18 = vld [vmem:[#allocation7 + $0x78] sm:$0xff]  ;;  %v128_v42 = vsub.s32 0, %v127_v34  ;;  %v132_v43 = vsub.s32 1, %v127_v34 }
  0x3c   :  { %370 = vmatprep.subr.bf16.mxu0 %v369_v8  ;;  %434 = vmatprep.subr.bf16.mxu1 %v369_v8  ;;  %v375_v19 = vpack.c.bf16 %v69_v16, %v67_v15  ;;  %v377_v20 = vpack.c.bf16 %v74_v18, %v72_v17  ;;  %v71_v21 = vld [vmem:[#allocation7 + $0x60] sm:$0xff]  ;;  %v73_v22 = vld [vmem:[#allocation7 + $0x70] sm:$0xff]  ;;  %v76_v23 = vld [vmem:[#allocation7 + $0x88] sm:$0xff]  ;;  %v693_v44 = vsub.s32 %v137_v35, %v127_v34 }
  0x3d   :  { %v78_v24 = vld [vmem:[#allocation7 + $0x98] sm:$0xff]  ;;  %v379_v28 = vpack.c.bf16 %v73_v22, %v71_v21  ;;  %v75_v30 = vld [vmem:[#allocation7 + $0x80] sm:$0xff]  ;;  %v77_v31 = vld [vmem:[#allocation7 + $0x90] sm:$0xff] }
  0x3e   :  { %v381_v29 = vpack.c.bf16 %v78_v24, %v76_v23  ;;  %v80_v32 = vld [vmem:[#allocation7 + $0xa8] sm:$0xff]  ;;  %v82_v33 = vld [vmem:[#allocation7 + $0xb8] sm:$0xff]  ;;  %v383_v36 = vpack.c.bf16 %v77_v31, %v75_v30  ;;  %v79_v38 = vld [vmem:[#allocation7 + $0xa0] sm:$0xff] }
  0x3f   :  { %372 = vmatpush1.bf16.msra.mxu0 %v371_v13  ;;  %436 = vmatpush1.bf16.msra.mxu1 %v371_v13  ;;  %v385_v37 = vpack.c.bf16 %v82_v33, %v80_v32  ;;  %v81_v39 = vld [vmem:[#allocation7 + $0xb0] sm:$0xff]  ;;  %v84_v40 = vld [vmem:[#allocation7 + $0xc8] sm:$0xff]  ;;  %v86_v41 = vld [vmem:[#allocation7 + $0xd8] sm:$0xff] }
  0x40   :  { %374 = vmatprep.subr.bf16.mxu0 %v373_v14  ;;  %438 = vmatprep.subr.bf16.mxu1 %v373_v14  ;;  %v387_v45 = vpack.c.bf16 %v81_v39, %v79_v38  ;;  %v83_v46 = vld [vmem:[#allocation7 + $0xc0] sm:$0xff]  ;;  %v389_v47 = vpack.c.bf16 %v86_v41, %v84_v40  ;;  %v85_v48 = vld [vmem:[#allocation7 + $0xd0] sm:$0xff]  ;;  %v58_v49 = vld [vmem:[%s745_s2] sm:$0x3]  ;;  %s625_s2 = smov [#allocation8]  }
  0x41   :  { %v123_v50 = vld [vmem:[#allocation2] sm:$0xf]  ;;  %v88_v51 = vld [vmem:[#allocation7 + $0xe8] sm:$0xff]  ;;  %v129_v53 = vrot.slane %v58_v49, %v128_v42  ;;  %v133_v54 = vrot.slane %v58_v49, %v132_v43  ;;  %v124_v56 = vld [vmem:[#allocation5] sm:$0xf]  ;;  %v391_v58 = vpack.c.bf16 %v85_v48, %v83_v46  ;;  %s341_s30 = sshll.u32 %s625_s2, 4  ;;  %s342_s30 = int_to_ptr.vmem [resolvable:$true] %s341_s30 }
  0x42   :  { %v90_v52 = vld [vmem:[#allocation7 + $0xf8] sm:$0xff]  ;;  %v699_v55 = vrot.slane %v123_v50, %v693_v44  ;;  %v702_v57 = vrot.slane %v124_v56, %v693_v44  ;;  %v87_v62 = vld [vmem:[#allocation7 + $0xe0] sm:$0xff]  ;;  %v89_v63 = vld [vmem:[#allocation7 + $0xf0] sm:$0xff]  ;;  %s567_s8 = scalar_lea.vmem %s342_s30, 64  ;;  %p572_p11 = scmp.lt.s32.totalorder %s342_s30, %s342_s30 }
  0x43   :  { %376 = vmatpush1.bf16.msra.mxu0 %v375_v19  ;;  %440 = vmatpush1.bf16.msra.mxu1 %v375_v19  ;;  %v134_v59 = vcombine.low %v129_v53, %v133_v54  ;;  %v393_v61 = vpack.c.bf16 %v90_v52, %v88_v51  ;;  %v92_v1 = vld [vmem:[#allocation7 + $0x108] sm:$0xff]  ;;  %v94_v2 = vld [vmem:[#allocation7 + $0x118] sm:$0xff]  ;;  %v395_v4 = vpack.c.bf16 %v89_v63, %v87_v62  ;;  %v91_v8 = vld [vmem:[#allocation7 + $0x100] sm:$0xff]  ;;  %p568_p10 = scmp.ne.s32.totalorder %s342_s30, %s567_s8  ;;  %p573_p12 = scmp.lt.s32.totalorder %s567_s8, %s567_s8 }
  0x44   :  { %378 = vmatprep.subr.bf16.mxu0 %v377_v20  ;;  %442 = vmatprep.subr.bf16.mxu1 %v377_v20  ;;  %v152_v60 = vcombine.high %v699_v55, %v699_v55  ;;  %v248_v0 = vcombine.high %v702_v57, %v702_v57  ;;  %v397_v7 = vpack.c.bf16 %v94_v2, %v92_v1  ;;  %v93_v9 = vld [vmem:[#allocation7 + $0x110] sm:$0xff]  ;;  %v96_v10 = vld [vmem:[#allocation7 + $0x128] sm:$0xff]  ;;  %v98_v11 = vld [vmem:[#allocation7 + $0x138] sm:$0xff] }
  0x45   :  { %v141_v3 = vrot.slane %v134_v59, %v693_v44  ;;  %v399_v12 = vpack.c.bf16 %v93_v9, %v91_v8  ;;  %v401_v13 = vpack.c.bf16 %v98_v11, %v96_v10  ;;  %v95_v14 = vld [vmem:[#allocation7 + $0x120] sm:$0xff]  ;;  %v97_v15 = vld [vmem:[#allocation7 + $0x130] sm:$0xff]  ;;  %v100_v16 = vld [vmem:[#allocation7 + $0x148] sm:$0xff]  ;;  %p574_p13 = por %p573_p12, %p572_p11 }
  0x46   :  { %219 = vmatprep.mubr.f32.mxu0 %v152_v60  ;;  %315 = vmatprep.mubr.f32.mxu1 %v248_v0  ;;  %v102_v17 = vld [vmem:[#allocation7 + $0x158] sm:$0xff]  ;;  %v403_v18 = vpack.c.bf16 %v97_v15, %v95_v14  ;;  %v99_v20 = vld [vmem:[#allocation7 + $0x140] sm:$0xff]  ;;  %v101_v21 = vld [vmem:[#allocation7 + $0x150] sm:$0xff] }
  0x47   :  { %380 = vmatpush1.bf16.msra.mxu0 %v379_v28  ;;  %444 = vmatpush1.bf16.msra.mxu1 %v379_v28  ;;  %v709_v5 = vmul.f32 %v141_v3, %v123_v50  ;;  %v711_v6 = vmul.f32 %v141_v3, %v124_v56  ;;  %v405_v19 = vpack.c.bf16 %v102_v17, %v100_v16  ;;  %v104_v22 = vld [vmem:[#allocation7 + $0x168] sm:$0xff]  ;;  %v106_v23 = vld [vmem:[#allocation7 + $0x178] sm:$0xff]  ;;  %v103_v26 = vld [vmem:[#allocation7 + $0x160] sm:$0xff]  ;;  %p575_p0 = pnand %p574_p13, %p568_p10 }
  0x48   :  { %382 = vmatprep.subr.bf16.mxu0 %v381_v29  ;;  %446 = vmatprep.subr.bf16.mxu1 %v381_v29  ;;  %v407_v24 = vpack.c.bf16 %v101_v21, %v99_v20  ;;  %v409_v25 = vpack.c.bf16 %v106_v23, %v104_v22  ;;  %v105_v27 = vld [vmem:[#allocation7 + $0x170] sm:$0xff]  ;;  %v108_v28 = vld [vmem:[#allocation7 + $0x188] sm:$0xff]  ;;  %v110_v29 = vld [vmem:[#allocation7 + $0x198] sm:$0xff] }
  0x49   :  { %v411_v30 = vpack.c.bf16 %v105_v27, %v103_v26  ;;  %v413_v31 = vpack.c.bf16 %v110_v29, %v108_v28  ;;  %v107_v32 = vld [vmem:[#allocation7 + $0x180] sm:$0xff]  ;;  %v109_v33 = vld [vmem:[#allocation7 + $0x190] sm:$0xff]  ;;  %v112_v34 = vld [vmem:[#allocation7 + $0x1a8] sm:$0xff] }
  0x4a   :  { %v114_v35 = vld [vmem:[#allocation7 + $0x1b8] sm:$0xff]  ;;  %v111_v38 = vld [vmem:[#allocation7 + $0x1a0] sm:$0xff]  ;;  %v113_v39 = vld [vmem:[#allocation7 + $0x1b0] sm:$0xff] }
  0x4b   :  { %384 = vmatpush1.bf16.msra.mxu0 %v383_v36  ;;  %448 = vmatpush1.bf16.msra.mxu1 %v383_v36  ;;  %v415_v36 = vpack.c.bf16 %v109_v33, %v107_v32  ;;  %v116_v40 = vld [vmem:[#allocation7 + $0x1c8] sm:$0xff]  ;;  %v118_v41 = vld [vmem:[#allocation7 + $0x1d8] sm:$0xff]  ;;  %v419_v42 = vpack.c.bf16 %v113_v39, %v111_v38  ;;  %v117_v46 = vld [vmem:[#allocation7 + $0x1d0] sm:$0xff] }
  0x4c   :  { %386 = vmatprep.subr.bf16.mxu0 %v385_v37  ;;  %450 = vmatprep.subr.bf16.mxu1 %v385_v37  ;;  %v417_v37 = vpack.c.bf16 %v114_v35, %v112_v34  ;;  %v421_v43 = vpack.c.bf16 %v118_v41, %v116_v40  ;;  %v122_v48 = vld [vmem:[#allocation7 + $0x1f8] sm:$0xff]  ;;  %v119_v51 = vld [vmem:[#allocation7 + $0x1e0] sm:$0xff]  ;;  %v121_v52 = vld [vmem:[#allocation7 + $0x1f0] sm:$0xff] }
  0x4d   :  { %v427_v53 = vpack.c.bf16 %v121_v52, %v119_v51 }
  0x4f   :  { %388 = vmatpush1.bf16.msra.mxu0 %v387_v45  ;;  %452 = vmatpush1.bf16.msra.mxu1 %v387_v45  ;;  %v115_v45 = vld [vmem:[#allocation7 + $0x1c0] sm:$0xff] }
  0x50   :  { %390 = vmatprep.subr.bf16.mxu0 %v389_v47  ;;  %454 = vmatprep.subr.bf16.mxu1 %v389_v47  ;;  %v120_v47 = vld [vmem:[#allocation7 + $0x1e8] sm:$0xff]  ;;  %v423_v49 = vpack.c.bf16 %v117_v46, %v115_v45 }
  0x51   :  { %v425_v50 = vpack.c.bf16 %v122_v48, %v120_v47 }
  0x53   :  { %392 = vmatpush1.bf16.msra.mxu0 %v391_v58  ;;  %456 = vmatpush1.bf16.msra.mxu1 %v391_v58 }
  0x54   :  { %394 = vmatprep.subr.bf16.mxu0 %v393_v61  ;;  %458 = vmatprep.subr.bf16.mxu1 %v393_v61 }
  0x57   :  { %396 = vmatpush1.bf16.msra.mxu0 %v395_v4  ;;  %460 = vmatpush1.bf16.msra.mxu1 %v395_v4 }
  0x58   :  { %398 = vmatprep.subr.bf16.mxu0 %v397_v7  ;;  %462 = vmatprep.subr.bf16.mxu1 %v397_v7 }
  0x5b   :  { %400 = vmatpush1.bf16.msra.mxu0 %v399_v12  ;;  %464 = vmatpush1.bf16.msra.mxu1 %v399_v12 }
  0x5c   :  { %402 = vmatprep.subr.bf16.mxu0 %v401_v13  ;;  %466 = vmatprep.subr.bf16.mxu1 %v401_v13 }
  0x5f   :  { %404 = vmatpush1.bf16.msra.mxu0 %v403_v18  ;;  %468 = vmatpush1.bf16.msra.mxu1 %v403_v18 }
  0x60   :  { %406 = vmatprep.subr.bf16.mxu0 %v405_v19  ;;  %470 = vmatprep.subr.bf16.mxu1 %v405_v19 }
  0x63   :  { %408 = vmatpush1.bf16.msra.mxu0 %v407_v24  ;;  %472 = vmatpush1.bf16.msra.mxu1 %v407_v24 }
  0x64   :  { %410 = vmatprep.subr.bf16.mxu0 %v409_v25  ;;  %474 = vmatprep.subr.bf16.mxu1 %v409_v25 }
  0x67   :  { %412 = vmatpush1.bf16.msra.mxu0 %v411_v30  ;;  %476 = vmatpush1.bf16.msra.mxu1 %v411_v30 }
  0x68   :  { %414 = vmatprep.subr.bf16.mxu0 %v413_v31  ;;  %478 = vmatprep.subr.bf16.mxu1 %v413_v31 }
  0x6b   :  { %416 = vmatpush1.bf16.msra.mxu0 %v415_v36  ;;  %480 = vmatpush1.bf16.msra.mxu1 %v415_v36 }
  0x6c   :  { %418 = vmatprep.subr.bf16.mxu0 %v417_v37  ;;  %482 = vmatprep.subr.bf16.mxu1 %v417_v37 }
  0x6f   :  { %420 = vmatpush1.bf16.msra.mxu0 %v419_v42  ;;  %484 = vmatpush1.bf16.msra.mxu1 %v419_v42 }
  0x70   :  { %422 = vmatprep.subr.bf16.mxu0 %v421_v43  ;;  %486 = vmatprep.subr.bf16.mxu1 %v421_v43 }
  0x73   :  { %424 = vmatpush1.bf16.msra.mxu0 %v423_v49  ;;  %488 = vmatpush1.bf16.msra.mxu1 %v423_v49 }
  0x74   :  { %426 = vmatprep.subr.bf16.mxu0 %v425_v50  ;;  %490 = vmatprep.subr.bf16.mxu1 %v425_v50 }
  0x77   :  { %428 = vmatpush1.bf16.msra.mxu0 %v427_v53  ;;  %492 = vmatpush1.bf16.msra.mxu1 %v427_v53 }
  0x7a   :  { %220 = vmatmul.mubr.f32.vlgmr.msra.gmra.mrb[0].mxu0 %v699_v55  ;;  %316 = vmatmul.mubr.f32.vlgmr.msra.gmra.mrb[0].mxu1 %v702_v57 }
 0x14d   :  { %v221_v54 = vpop.f32.mrb[0].mxu0  ;;  %v317_v56 = vpop.f32.mrb[0].mxu1 }
 0x14e   :  { %v223_v58 = vpop.f32.mrb[1].mxu0  ;;  %v319_v59 = vpop.f32.mrb[1].mxu1 }
 0x14f   :  { %v228_v60 = vcombine.low %v221_v54, %v223_v58  ;;  %v324_v61 = vcombine.low %v317_v56, %v319_v59 }
 0x151   :  { %v235_v62 = vrot.slane %v228_v60, %v693_v44  ;;  %v331_v63 = vrot.slane %v324_v61, %v693_v44 }
 0x153   :  { %v237_v0 = vadd.f32 %v235_v62, %v709_v5  ;;  %v333_v55 = vadd.f32 %v331_v63, %v711_v6 }
 0x155   :  { %238 = vst [vmem:[#allocation8] sm:$0xf] %v237_v0  ;;  %334 = vst [vmem:[#allocation9] sm:$0xf] %v333_v55 }
 0x156   :  { %578 = shalt.err (!%p575_p0)
}
 0x157   :  { %s579_s11 = scalar_lea.hbm %s747_s4, 64 }
 0x158   :  { %p580_p1 = scmp.ne.s32.totalorder %s747_s4, %s579_s11  ;;  %p583_p2 = scmp.lt.u32.totalorder %s579_s11, %s747_s4 }
 0x15a   :  { %p585_p3 = pnand %p583_p2, %p580_p1 }
 0x15c   :  { %588 = shalt.err (!%p585_p3)
}
 0x15d   :  { %344 = dma.vmem_to_hbm [thread:$0]  %s342_s30, 64, %s747_s4, [#allocation4]  }
 0x15e   :  { %s589_s17 = scalar_lea.vmem %s352_s7, 64  ;;  %p594_p5 = scmp.lt.s32.totalorder %s352_s7, %s352_s7 }
 0x15f   :  { %p590_p4 = scmp.ne.s32.totalorder %s352_s7, %s589_s17  ;;  %p595_p6 = scmp.lt.s32.totalorder %s589_s17, %s589_s17 }
 0x161   :  { %p596_p7 = por %p595_p6, %p594_p5 }
 0x163   :  { %p597_p8 = pnand %p596_p7, %p590_p4 }
 0x165   :  { %600 = shalt.err (!%p597_p8)
}
 0x166   :  { %s601_s20 = scalar_lea.hbm %s748_s5, 64 }
 0x167   :  { %p602_p9 = scmp.ne.s32.totalorder %s748_s5, %s601_s20  ;;  %p605_p10 = scmp.lt.u32.totalorder %s601_s20, %s748_s5 }
 0x169   :  { %p607_p11 = pnand %p605_p10, %p602_p9 }
 0x16b   :  { %610 = shalt.err (!%p607_p11)
}
 0x16c   :  { %354 = dma.vmem_to_hbm [thread:$0]  %s352_s7, 64, %s748_s5, [#allocation10]  }
 0x16d   :  { %615 = dma.done.wait [#allocation4], 64  }
 0x16e   :  { %616 = vsyncadd [#allocation4], 4294967232 }
 0x16f   :  { %617 = dma.done.wait [#allocation10], 64  }
 0x170   :  { %618 = vsyncadd [#allocation10], 4294967232 }
 0x171   :  { %361 = vsyncpa [#allocation3], 1 }
 0x172   :  { %362 = vsyncpa [#allocation6], 1 }
 0x173   :  { %363 = vsyncpa [#allocation4], 1 }
 0x174   :  { %364 = vsyncpa [#allocation10], 1 }

</bundles_post_ra>
